<compile_context>
chip_gen: v6e
topology: v6e:2x2x1
jax: 0.10.0
libtpu: 0.0.40
codegen_flags: <defaults>
</compile_context>

<pallas_src>
import functools

import jax
import jax.numpy as jnp
from jax.experimental import pallas as pl
from jax.experimental.pallas import tpu as pltpu

EPS = 1e-5
NEG_SLOPE = 0.01      # nn.LeakyReLU default
_SLAB_LANES = 256     # lane-padded width of the packed parameter slab
_SLAB_ROWS = 8        # sublane-padded row count

# Row layout of the packed parameter slab (one (8, 256) f32 array).
_G1, _BE1, _G2, _BE2, _G3, _BE3, _B4 = range(7)


def _bn_leaky(h, gamma, beta):
    """Training-mode BatchNorm1d (batch stats, biased var) + LeakyReLU, fused affine."""
    inv_n = 1.0 / h.shape[0]
    mean = jnp.sum(h, axis=0, keepdims=True) * inv_n
    mean_sq = jnp.sum(h * h, axis=0, keepdims=True) * inv_n
    var = mean_sq - mean * mean
    scale = gamma * jax.lax.rsqrt(var + EPS)
    shift = beta - mean * scale
    h = h * scale + shift
    return jnp.where(h >= 0, h, NEG_SLOPE * h)


def discriminator_kernel(x_ref, w1_ref, w2_ref, w3_ref, w4_ref, p_ref, out_ref):
    x = x_ref[...]
    p = p_ref[...]  # (8, 256) packed gamma/beta/b4 slab, loaded once

    # Linear biases b1/b2/b3 intentionally omitted: cancelled by the BN batch mean.
    h = jnp.dot(x, w1_ref[...], preferred_element_type=jnp.float32)
    h = _bn_leaky(h, p[_G1, :200], p[_BE1, :200])

    h = jnp.dot(h, w2_ref[...], preferred_element_type=jnp.float32)
    h = _bn_leaky(h, p[_G2, :60], p[_BE2, :60])

    h = jnp.dot(h, w3_ref[...], preferred_element_type=jnp.float32)
    h = _bn_leaky(h, p[_G3, :10], p[_BE3, :10])

    out_ref[...] = (jnp.dot(h, w4_ref[...], preferred_element_type=jnp.float32)
                    + p[_B4, :2])


def _vmem_spec():
    return pl.BlockSpec(memory_space=pltpu.MemorySpace.VMEM)


@functools.partial(jax.jit, static_argnames=())
def cell_discriminator_forward(x, packed_params, alpha=1.0):
    # Gradient reversal is the identity in the forward pass; alpha only scales
    # gradients, which this forward-only kernel does not compute.
    del alpha
    args = (x,) + tuple(packed_params)
    return pl.pallas_call(
        discriminator_kernel,
        out_shape=jax.ShapeDtypeStruct((x.shape[0], 2), jnp.float32),
        in_specs=[_vmem_spec() for _ in args],
        out_specs=_vmem_spec(),
    )(*args)


def init_params(key, input_dim):
    """PyTorch-style parameters (weights stored transposed as (in, out)).

    Returns the full 14-tuple (including the BN-dead biases b1/b2/b3 and
    gamma/beta) so the reference can verify that dropping them in the kernel
    is exact. gamma/beta are perturbed from the PyTorch default (1, 0) purely
    to exercise the affine path in the test.
    """
    dims = [(input_dim, 200), (200, 60), (60, 10), (10, 2)]
    keys = jax.random.split(key, 4 * len(dims))
    params = []
    for li, (fan_in, fan_out) in enumerate(dims):
        bound = 1.0 / jnp.sqrt(jnp.float32(fan_in))
        w = jax.random.uniform(keys[4 * li], (fan_in, fan_out),
                               minval=-bound, maxval=bound, dtype=jnp.float32)
        b = jax.random.uniform(keys[4 * li + 1], (1, fan_out),
                               minval=-bound, maxval=bound, dtype=jnp.float32)
        params += [w, b]
        if li < 3:  # BatchNorm after the first three linears
            g = 1.0 + 0.1 * jax.random.normal(keys[4 * li + 2], (1, fan_out),
                                              dtype=jnp.float32)
            be = 0.1 * jax.random.normal(keys[4 * li + 3], (1, fan_out),
                                         dtype=jnp.float32)
            params += [g, be]
    return tuple(params)


def pack_params(params):
    """One-time packing of kernel inputs: 4 weight matrices + one (8, 256) slab.

    b1/b2/b3 are dropped (cancelled by training-mode BN mean subtraction);
    gamma/beta for the three BN layers and the final bias b4 are stacked into a
    single lane-padded slab so the kernel has 6 inputs instead of 14.
    """
    (w1, _b1, g1, be1, w2, _b2, g2, be2, w3, _b3, g3, be3, w4, b4) = params

    def row(v):
        v = jnp.ravel(v).astype(jnp.float32)
        return jnp.pad(v, (0, _SLAB_LANES - v.shape[0]))

    rows = [row(g1), row(be1), row(g2), row(be2), row(g3), row(be3), row(b4)]
    rows += [jnp.zeros((_SLAB_LANES,), jnp.float32)] * (_SLAB_ROWS - len(rows))
    slab = jnp.stack(rows)  # (8, 256)
    return (w1, w2, w3, w4, slab)


def _bn_leaky_ref(h, gamma, beta):
    mean = jnp.mean(h, axis=0, keepdims=True)
    var = jnp.mean((h - mean) ** 2, axis=0, keepdims=True)
    h = (h - mean) * jax.lax.rsqrt(var + EPS) * gamma + beta
    return jnp.where(h >= 0, h, NEG_SLOPE * h)


def reference_forward(x, params):
    """Straight transcription of the PyTorch module (keeps the linear biases)."""
    (w1, b1, g1, be1, w2, b2, g2, be2, w3, b3, g3, be3, w4, b4) = params
    h = x @ w1 + b1
    h = _bn_leaky_ref(h, g1, be1)
    h = h @ w2 + b2
    h = _bn_leaky_ref(h, g2, be2)
    h = h @ w3 + b3
    h = _bn_leaky_ref(h, g3, be3)
    return h @ w4 + b4


if __name__ == "__main__":
    B, INPUT_DIM = 8, 32
    key = jax.random.PRNGKey(0)
    kx, kp = jax.random.split(key)
    x = jax.random.normal(kx, (B, INPUT_DIM), dtype=jnp.float32)
    params = init_params(kp, INPUT_DIM)
    packed = pack_params(params)

    out = cell_discriminator_forward(x, packed, alpha=1.0)
    out = jax.block_until_ready(out)

    ref = reference_forward(x, params)
    assert out.shape == (B, 2), out.shape
    assert jnp.allclose(out, ref, atol=5e-4, rtol=5e-4), (
        f"max abs err {jnp.max(jnp.abs(out - ref))}")
    print("KERNEL_OK")
</pallas_src>

<mosaic_0001>
module attributes {stable_mosaic.version = 11 : i64} {
  func.func @discriminator_kernel(%arg0: memref<8x32xf32, #tpu.memory_space<vmem>>, %arg1: memref<32x200xf32, #tpu.memory_space<vmem>>, %arg2: memref<200x60xf32, #tpu.memory_space<vmem>>, %arg3: memref<60x10xf32, #tpu.memory_space<vmem>>, %arg4: memref<10x2xf32, #tpu.memory_space<vmem>>, %arg5: memref<8x256xf32, #tpu.memory_space<vmem>>, %arg6: memref<8x2xf32, #tpu.memory_space<vmem>>) attributes {dimension_semantics = [], scalar_prefetch = 0 : i64, scratch_operands = 0 : i64, tpu.core_type = #tpu.core_type<tc>} {
    %c0 = arith.constant 0 : index
    %c0_0 = arith.constant 0 : index
    %0 = vector.load %arg0[%c0, %c0_0] : memref<8x32xf32, #tpu.memory_space<vmem>>, vector<8x32xf32>
    %c0_1 = arith.constant 0 : index
    %c0_2 = arith.constant 0 : index
    %1 = vector.load %arg5[%c0_1, %c0_2] : memref<8x256xf32, #tpu.memory_space<vmem>>, vector<8x256xf32>
    %c0_3 = arith.constant 0 : index
    %c0_4 = arith.constant 0 : index
    %2 = vector.load %arg1[%c0_3, %c0_4] : memref<32x200xf32, #tpu.memory_space<vmem>>, vector<32x200xf32>
    %cst = arith.constant dense<0.000000e+00> : vector<8x200xf32>
    %3 = tpu.matmul %0, %2, %cst {dimension_numbers = #tpu.dot_dimension_numbers<[1], [0], [0], [1], [0, 0, 1, 1], [], []>} : vector<8x32xf32>, vector<32x200xf32>, vector<8x200xf32> -> vector<8x200xf32>
    %4 = vector.extract_strided_slice %1 {offsets = [0, 0], sizes = [1, 200], strides = [1, 1]} : vector<8x256xf32> to vector<1x200xf32>
    %5 = vector.shape_cast %4 : vector<1x200xf32> to vector<200xf32>
    %6 = vector.extract_strided_slice %1 {offsets = [1, 0], sizes = [1, 200], strides = [1, 1]} : vector<8x256xf32> to vector<1x200xf32>
    %7 = vector.shape_cast %6 : vector<1x200xf32> to vector<200xf32>
    %cst_5 = arith.constant dense<0.000000e+00> : vector<200xf32>
    %8 = vector.multi_reduction <add>, %3, %cst_5 [0] : vector<8x200xf32> to vector<200xf32>
    %9 = vector.shape_cast %8 : vector<200xf32> to vector<1x200xf32>
    %cst_6 = arith.constant 1.250000e-01 : f32
    %10 = vector.broadcast %cst_6 : f32 to vector<1x200xf32>
    %11 = arith.mulf %9, %10 : vector<1x200xf32>
    %12 = arith.mulf %3, %3 : vector<8x200xf32>
    %cst_7 = arith.constant dense<0.000000e+00> : vector<200xf32>
    %13 = vector.multi_reduction <add>, %12, %cst_7 [0] : vector<8x200xf32> to vector<200xf32>
    %14 = vector.shape_cast %13 : vector<200xf32> to vector<1x200xf32>
    %cst_8 = arith.constant 1.250000e-01 : f32
    %15 = vector.broadcast %cst_8 : f32 to vector<1x200xf32>
    %16 = arith.mulf %14, %15 : vector<1x200xf32>
    %17 = arith.mulf %11, %11 : vector<1x200xf32>
    %18 = arith.subf %16, %17 : vector<1x200xf32>
    %cst_9 = arith.constant 9.99999974E-6 : f32
    %19 = vector.broadcast %cst_9 : f32 to vector<1x200xf32>
    %20 = arith.addf %18, %19 : vector<1x200xf32>
    %21 = math.rsqrt %20 : vector<1x200xf32>
    %22 = vector.shape_cast %5 : vector<200xf32> to vector<1x200xf32>
    %23 = arith.mulf %22, %21 : vector<1x200xf32>
    %24 = arith.mulf %11, %23 : vector<1x200xf32>
    %25 = vector.shape_cast %7 : vector<200xf32> to vector<1x200xf32>
    %26 = arith.subf %25, %24 : vector<1x200xf32>
    %27 = vector.broadcast %23 : vector<1x200xf32> to vector<8x200xf32>
    %28 = arith.mulf %3, %27 : vector<8x200xf32>
    %29 = vector.broadcast %26 : vector<1x200xf32> to vector<8x200xf32>
    %30 = arith.addf %28, %29 : vector<8x200xf32>
    %cst_10 = arith.constant 0.000000e+00 : f32
    %31 = vector.broadcast %cst_10 : f32 to vector<8x200xf32>
    %32 = arith.cmpf oge, %30, %31 : vector<8x200xf32>
    %cst_11 = arith.constant 0.00999999977 : f32
    %33 = vector.broadcast %cst_11 : f32 to vector<8x200xf32>
    %34 = arith.mulf %33, %30 : vector<8x200xf32>
    %35 = arith.select %32, %30, %34 : vector<8x200xi1>, vector<8x200xf32>
    %c0_12 = arith.constant 0 : index
    %c0_13 = arith.constant 0 : index
    %36 = vector.load %arg2[%c0_12, %c0_13] : memref<200x60xf32, #tpu.memory_space<vmem>>, vector<200x60xf32>
    %cst_14 = arith.constant dense<0.000000e+00> : vector<8x60xf32>
    %37 = tpu.matmul %35, %36, %cst_14 {dimension_numbers = #tpu.dot_dimension_numbers<[1], [0], [0], [1], [0, 0, 1, 1], [], []>} : vector<8x200xf32>, vector<200x60xf32>, vector<8x60xf32> -> vector<8x60xf32>
    %38 = vector.extract_strided_slice %1 {offsets = [2, 0], sizes = [1, 60], strides = [1, 1]} : vector<8x256xf32> to vector<1x60xf32>
    %39 = vector.shape_cast %38 : vector<1x60xf32> to vector<60xf32>
    %40 = vector.extract_strided_slice %1 {offsets = [3, 0], sizes = [1, 60], strides = [1, 1]} : vector<8x256xf32> to vector<1x60xf32>
    %41 = vector.shape_cast %40 : vector<1x60xf32> to vector<60xf32>
    %cst_15 = arith.constant dense<0.000000e+00> : vector<60xf32>
    %42 = vector.multi_reduction <add>, %37, %cst_15 [0] : vector<8x60xf32> to vector<60xf32>
    %43 = vector.shape_cast %42 : vector<60xf32> to vector<1x60xf32>
    %cst_16 = arith.constant 1.250000e-01 : f32
    %44 = vector.broadcast %cst_16 : f32 to vector<1x60xf32>
    %45 = arith.mulf %43, %44 : vector<1x60xf32>
    %46 = arith.mulf %37, %37 : vector<8x60xf32>
    %cst_17 = arith.constant dense<0.000000e+00> : vector<60xf32>
    %47 = vector.multi_reduction <add>, %46, %cst_17 [0] : vector<8x60xf32> to vector<60xf32>
    %48 = vector.shape_cast %47 : vector<60xf32> to vector<1x60xf32>
    %cst_18 = arith.constant 1.250000e-01 : f32
    %49 = vector.broadcast %cst_18 : f32 to vector<1x60xf32>
    %50 = arith.mulf %48, %49 : vector<1x60xf32>
    %51 = arith.mulf %45, %45 : vector<1x60xf32>
    %52 = arith.subf %50, %51 : vector<1x60xf32>
    %cst_19 = arith.constant 9.99999974E-6 : f32
    %53 = vector.broadcast %cst_19 : f32 to vector<1x60xf32>
    %54 = arith.addf %52, %53 : vector<1x60xf32>
    %55 = math.rsqrt %54 : vector<1x60xf32>
    %56 = vector.shape_cast %39 : vector<60xf32> to vector<1x60xf32>
    %57 = arith.mulf %56, %55 : vector<1x60xf32>
    %58 = arith.mulf %45, %57 : vector<1x60xf32>
    %59 = vector.shape_cast %41 : vector<60xf32> to vector<1x60xf32>
    %60 = arith.subf %59, %58 : vector<1x60xf32>
    %61 = vector.broadcast %57 : vector<1x60xf32> to vector<8x60xf32>
    %62 = arith.mulf %37, %61 : vector<8x60xf32>
    %63 = vector.broadcast %60 : vector<1x60xf32> to vector<8x60xf32>
    %64 = arith.addf %62, %63 : vector<8x60xf32>
    %cst_20 = arith.constant 0.000000e+00 : f32
    %65 = vector.broadcast %cst_20 : f32 to vector<8x60xf32>
    %66 = arith.cmpf oge, %64, %65 : vector<8x60xf32>
    %cst_21 = arith.constant 0.00999999977 : f32
    %67 = vector.broadcast %cst_21 : f32 to vector<8x60xf32>
    %68 = arith.mulf %67, %64 : vector<8x60xf32>
    %69 = arith.select %66, %64, %68 : vector<8x60xi1>, vector<8x60xf32>
    %c0_22 = arith.constant 0 : index
    %c0_23 = arith.constant 0 : index
    %70 = vector.load %arg3[%c0_22, %c0_23] : memref<60x10xf32, #tpu.memory_space<vmem>>, vector<60x10xf32>
    %cst_24 = arith.constant dense<0.000000e+00> : vector<8x10xf32>
    %71 = tpu.matmul %69, %70, %cst_24 {dimension_numbers = #tpu.dot_dimension_numbers<[1], [0], [0], [1], [0, 0, 1, 1], [], []>} : vector<8x60xf32>, vector<60x10xf32>, vector<8x10xf32> -> vector<8x10xf32>
    %72 = vector.extract_strided_slice %1 {offsets = [4, 0], sizes = [1, 10], strides = [1, 1]} : vector<8x256xf32> to vector<1x10xf32>
    %73 = vector.shape_cast %72 : vector<1x10xf32> to vector<10xf32>
    %74 = vector.extract_strided_slice %1 {offsets = [5, 0], sizes = [1, 10], strides = [1, 1]} : vector<8x256xf32> to vector<1x10xf32>
    %75 = vector.shape_cast %74 : vector<1x10xf32> to vector<10xf32>
    %cst_25 = arith.constant dense<0.000000e+00> : vector<10xf32>
    %76 = vector.multi_reduction <add>, %71, %cst_25 [0] : vector<8x10xf32> to vector<10xf32>
    %77 = vector.shape_cast %76 : vector<10xf32> to vector<1x10xf32>
    %cst_26 = arith.constant 1.250000e-01 : f32
    %78 = vector.broadcast %cst_26 : f32 to vector<1x10xf32>
    %79 = arith.mulf %77, %78 : vector<1x10xf32>
    %80 = arith.mulf %71, %71 : vector<8x10xf32>
    %cst_27 = arith.constant dense<0.000000e+00> : vector<10xf32>
    %81 = vector.multi_reduction <add>, %80, %cst_27 [0] : vector<8x10xf32> to vector<10xf32>
    %82 = vector.shape_cast %81 : vector<10xf32> to vector<1x10xf32>
    %cst_28 = arith.constant 1.250000e-01 : f32
    %83 = vector.broadcast %cst_28 : f32 to vector<1x10xf32>
    %84 = arith.mulf %82, %83 : vector<1x10xf32>
    %85 = arith.mulf %79, %79 : vector<1x10xf32>
    %86 = arith.subf %84, %85 : vector<1x10xf32>
    %cst_29 = arith.constant 9.99999974E-6 : f32
    %87 = vector.broadcast %cst_29 : f32 to vector<1x10xf32>
    %88 = arith.addf %86, %87 : vector<1x10xf32>
    %89 = math.rsqrt %88 : vector<1x10xf32>
    %90 = vector.shape_cast %73 : vector<10xf32> to vector<1x10xf32>
    %91 = arith.mulf %90, %89 : vector<1x10xf32>
    %92 = arith.mulf %79, %91 : vector<1x10xf32>
    %93 = vector.shape_cast %75 : vector<10xf32> to vector<1x10xf32>
    %94 = arith.subf %93, %92 : vector<1x10xf32>
    %95 = vector.broadcast %91 : vector<1x10xf32> to vector<8x10xf32>
    %96 = arith.mulf %71, %95 : vector<8x10xf32>
    %97 = vector.broadcast %94 : vector<1x10xf32> to vector<8x10xf32>
    %98 = arith.addf %96, %97 : vector<8x10xf32>
    %cst_30 = arith.constant 0.000000e+00 : f32
    %99 = vector.broadcast %cst_30 : f32 to vector<8x10xf32>
    %100 = arith.cmpf oge, %98, %99 : vector<8x10xf32>
    %cst_31 = arith.constant 0.00999999977 : f32
    %101 = vector.broadcast %cst_31 : f32 to vector<8x10xf32>
    %102 = arith.mulf %101, %98 : vector<8x10xf32>
    %103 = arith.select %100, %98, %102 : vector<8x10xi1>, vector<8x10xf32>
    %c0_32 = arith.constant 0 : index
    %c0_33 = arith.constant 0 : index
    %104 = vector.load %arg4[%c0_32, %c0_33] : memref<10x2xf32, #tpu.memory_space<vmem>>, vector<10x2xf32>
    %cst_34 = arith.constant dense<0.000000e+00> : vector<8x2xf32>
    %105 = tpu.matmul %103, %104, %cst_34 {dimension_numbers = #tpu.dot_dimension_numbers<[1], [0], [0], [1], [0, 0, 1, 1], [], []>} : vector<8x10xf32>, vector<10x2xf32>, vector<8x2xf32> -> vector<8x2xf32>
    %106 = vector.extract_strided_slice %1 {offsets = [6, 0], sizes = [1, 2], strides = [1, 1]} : vector<8x256xf32> to vector<1x2xf32>
    %107 = vector.shape_cast %106 : vector<1x2xf32> to vector<2xf32>
    %108 = vector.shape_cast %107 : vector<2xf32> to vector<1x2xf32>
    %109 = vector.broadcast %108 : vector<1x2xf32> to vector<8x2xf32>
    %110 = arith.addf %105, %109 : vector<8x2xf32>
    %c0_35 = arith.constant 0 : index
    %c0_36 = arith.constant 0 : index
    %111 = vector.load %arg6[%c0_35, %c0_36] : memref<8x2xf32, #tpu.memory_space<vmem>>, vector<8x2xf32>
    tpu.vector_store %arg6[%c0_35, %c0_36], %110 {strides = array<i32>} : memref<8x2xf32, #tpu.memory_space<vmem>>, vector<8x2xf32>,
    return
  }
}

</mosaic_0001>

<bundles_post_ra>
// kernel: cell_discriminator_forward.1
= control target key start
LH: loop header
LB: loop body
LE: loop exit
PB: predicated region body
PF: predicated region fallthrough
CT: control target
= control target key end

     0   :  { %v596_v3 = vmov 0.0   ;;  %vm34_vm0 = vcmask 261120   ;;  %vm115_vm1 = vcmask 588800   ;;  %vm338_vm4 = vcmask 1043456   ;;  %s841_s1 = inlined_call_operand.vmem [shape: f32[32,200], index: 1, kind: input, shape index: {}]   ;;  %s842_s0 = inlined_call_operand.vmem [shape: f32[8,32], index: 0, kind: input, shape index: {}]   ;;  %s843_s2 = inlined_call_operand.vmem [shape: f32[200,60], index: 2, kind: input, shape index: {}]   ;;  %s844_s5 = inlined_call_operand.vmem [shape: f32[8,256], index: 5, kind: input, shape index: {}]   ;;  %s845_s3 = inlined_call_operand.vmem [shape: f32[60,10], index: 3, kind: input, shape index: {}]   ;;  %s846_s4 = inlined_call_operand.vmem [shape: f32[10,2], index: 4, kind: input, shape index: {}]   ;;  %s847_s6 = inlined_call_operand.vmem [shape: f32[8,2], index: 6, kind: output, shape index: {}]  }
   0x1   :  { %v33_v0 = vld [vmem:[%s841_s1 + $0x38] sm:$0xff]  ;;  %v32_v1 = vld [vmem:[%s841_s1 + $0x30] sm:$0xff]  ;;  %v31_v2 = vld [vmem:[%s841_s1 + $0x28] sm:$0xff]  ;;  %102 = vmatprep.mubr.f32.mxu0 %v596_v3  ;;  %216 = vmatprep.subr.mxu1 %v596_v3  ;;  %vm597_vm5 = vmmov 0   ;;  %vm286_vm6 = vcmask 490496   ;;  %vm462_vm8 = vcmask 1041408  }
   0x2   :  { %62 = vmatprep.subr.mxu0 %v33_v0  ;;  %v30_v4 = vld [vmem:[%s841_s1 + $0x20] sm:$0xff]  ;;  %v29_v5 = vld [vmem:[%s841_s1 + $0x18] sm:$0xff]  ;;  %v28_v6 = vld [vmem:[%s841_s1 + $0x10] sm:$0xff]  ;;  %vm412_vm9 = vcmask 80896   ;;  %vm536_vm11 = vcmask 15360  }
   0x3   :  { %63 = vmatpush1.msra.mxu0 %v32_v1  ;;  %v27_v7 = vld [vmem:[%s841_s1 + $0x8] sm:$0xff]  ;;  %v26_v8 = vld [vmem:[%s841_s1] sm:$0xff]  ;;  %v203_v10 = vld [vmem:[%s843_s2 + $0x78] sm:$0xff] }
   0x4   :  { %64 = vmatprep.subr.mxu0 %v31_v2  ;;  %v23_v9 = vld [vmem:[%s842_s0] sm:$0xff]  ;;  %217 = vmatpush1.msra.mxu1 %v203_v10  ;;  %v202_v11 = vld [vmem:[%s843_s2 + $0x70] sm:$0xff]  ;;  %v201_v12 = vld [vmem:[%s843_s2 + $0x68] sm:$0xff] }
   0x5   :  { %65 = vmatpush1.msra.mxu0 %v30_v4  ;;  %218 = vmatprep.subr.mxu1 %v596_v3  ;;  %v200_v13 = vld [vmem:[%s843_s2 + $0x60] sm:$0xff]  ;;  %v199_v14 = vld [vmem:[%s843_s2 + $0x58] sm:$0xff]  ;;  %v198_v15 = vld [vmem:[%s843_s2 + $0x50] sm:$0xff] }
   0x6   :  { %66 = vmatprep.subr.mxu0 %v29_v5  ;;  %219 = vmatpush1.msra.mxu1 %v202_v11  ;;  %v197_v16 = vld [vmem:[%s843_s2 + $0x48] sm:$0xff]  ;;  %v196_v17 = vld [vmem:[%s843_s2 + $0x40] sm:$0xff]  ;;  %v195_v18 = vld [vmem:[%s843_s2 + $0x38] sm:$0xff] }
   0x7   :  { %67 = vmatpush1.msra.mxu0 %v28_v6  ;;  %220 = vmatprep.subr.mxu1 %v596_v3  ;;  %v194_v19 = vld [vmem:[%s843_s2 + $0x30] sm:$0xff]  ;;  %v193_v20 = vld [vmem:[%s843_s2 + $0x28] sm:$0xff]  ;;  %v192_v21 = vld [vmem:[%s843_s2 + $0x20] sm:$0xff] }
   0x8   :  { %68 = vmatprep.subr.mxu0 %v27_v7  ;;  %221 = vmatpush1.msra.mxu1 %v201_v12  ;;  %v191_v22 = vld [vmem:[%s843_s2 + $0x18] sm:$0xff]  ;;  %v190_v23 = vld [vmem:[%s843_s2 + $0x10] sm:$0xff]  ;;  %v189_v24 = vld [vmem:[%s843_s2 + $0x8] sm:$0xff]  ;;  %v162_v12 = vlaneseq }
   0x9   :  { %69 = vmatpush1.msra.mxu0 %v26_v8  ;;  %222 = vmatprep.subr.mxu1 %v596_v3  ;;  %v188_v25 = vld [vmem:[%s843_s2] sm:$0xff]  ;;  %v211_v27 = vld [vmem:[%s843_s2 + $0xb8] sm:$0xff]  ;;  %v210_v28 = vld [vmem:[%s843_s2 + $0xb0] sm:$0xff] }
   0xa   :  { %542 = vmatmul.mubr.msk.f32.vlgmr.msra.gmra.mxu0 %vm34_vm0, %v23_v9  ;;  %560 = vmatprep.subr.mxu0 %v596_v3  ;;  %v212_v26 = vld [vmem:[%s843_s2 + $0xc0] sm:$0xff]  ;;  %v209_v29 = vld [vmem:[%s843_s2 + $0xa8] sm:$0xff]  ;;  %v207_v31 = vld [vmem:[%s843_s2 + $0x98] sm:$0xff] }
   0xb   :  { %223 = vmatpush1.msra.mxu1 %v200_v13  ;;  %v208_v30 = vld [vmem:[%s843_s2 + $0xa0] sm:$0xff]  ;;  %v206_v32 = vld [vmem:[%s843_s2 + $0x90] sm:$0xff]  ;;  %v205_v33 = vld [vmem:[%s843_s2 + $0x88] sm:$0xff]  ;;  %v764_v13 = vshrl.u32 %v162_v12, 7  ;;  %576 = vmatprep.mubr.msk.f32.mxu0 %vm597_vm5, %v596_v3 }
   0xc   :  { %224 = vmatprep.subr.mxu1 %v596_v3  ;;  %v204_v34 = vld [vmem:[%s843_s2 + $0x80] sm:$0xff] }
   0xd   :  { %225 = vmatpush1.msra.mxu1 %v199_v14  ;;  %v769_v14 = vld [vmem:[%s844_s5] sm:$0xff] }
   0xe   :  { %226 = vmatprep.subr.mxu1 %v596_v3 }
   0xf   :  { %227 = vmatpush1.msra.mxu1 %v198_v15 }
  0x10   :  { %228 = vmatprep.subr.mxu1 %v596_v3 }
  0x11   :  { %229 = vmatpush1.msra.mxu1 %v197_v16 }
  0x12   :  { %230 = vmatprep.subr.mxu1 %v596_v3 }
  0x13   :  { %231 = vmatpush1.msra.mxu1 %v196_v17  ;;  %v164_v17 = vsub.s32 0, %v764_v13 }
  0x14   :  { %232 = vmatprep.subr.mxu1 %v596_v3 }
  0x15   :  { %233 = vmatpush1.msra.mxu1 %v195_v18  ;;  %v25_v18 = vld [vmem:[%s844_s5 + $0x8] sm:$0xff] }
  0x16   :  { %234 = vmatprep.subr.mxu1 %v596_v3 }
  0x17   :  { %235 = vmatpush1.msra.mxu1 %v194_v19 }
  0x18   :  { %236 = vmatprep.subr.mxu1 %v596_v3 }
  0x19   :  { %237 = vmatpush1.msra.mxu1 %v193_v20 }
  0x1a   :  { %238 = vmatprep.subr.mxu1 %v596_v3 }
  0x1b   :  { %239 = vmatpush1.msra.mxu1 %v192_v21 }
  0x1c   :  { %240 = vmatprep.subr.mxu1 %v596_v3 }
  0x1d   :  { %241 = vmatpush1.msra.mxu1 %v191_v22 }
  0x1e   :  { %242 = vmatprep.subr.mxu1 %v596_v3 }
  0x1f   :  { %243 = vmatpush1.msra.mxu1 %v190_v23  ;;  %v174_v23 = vsub.s32 1, %v764_v13 }
  0x20   :  { %244 = vmatprep.subr.mxu1 %v596_v3 }
  0x21   :  { %245 = vmatpush1.msra.mxu1 %v189_v24 }
  0x22   :  { %246 = vmatprep.subr.mxu1 %v596_v3 }
  0x23   :  { %247 = vmatpush1.msra.mxu1 %v188_v25 }
  0x24   :  { %262 = vmatprep.subr.mxu1 %v596_v3 }
  0x25   :  { %263 = vmatpush2.msra.mxu1 %v212_v26 }
  0x26   :  { %264 = vmatprep.subr.mxu1 %v596_v3 }
  0x27   :  { %265 = vmatpush2.msra.mxu1 %v211_v27 }
  0x28   :  { %266 = vmatprep.subr.mxu1 %v596_v3 }
  0x29   :  { %267 = vmatpush2.msra.mxu1 %v210_v28 }
  0x2a   :  { %268 = vmatprep.subr.mxu1 %v596_v3 }
  0x2b   :  { %269 = vmatpush2.msra.mxu1 %v209_v29 }
  0x2c   :  { %270 = vmatprep.subr.mxu1 %v596_v3 }
  0x2d   :  { %271 = vmatpush2.msra.mxu1 %v208_v30 }
  0x2e   :  { %272 = vmatprep.subr.mxu1 %v596_v3 }
  0x2f   :  { %273 = vmatpush2.msra.mxu1 %v207_v31 }
  0x30   :  { %274 = vmatprep.subr.mxu1 %v596_v3 }
  0x31   :  { %275 = vmatpush2.msra.mxu1 %v206_v32 }
  0x32   :  { %276 = vmatprep.subr.mxu1 %v596_v3 }
  0x33   :  { %277 = vmatpush2.msra.mxu1 %v205_v33 }
  0x34   :  { %278 = vmatprep.subr.mxu1 %v596_v3 }
  0x35   :  { %279 = vmatpush2.msra.mxu1 %v204_v34 }
  0xca   :  { %v104_v35 = vpop.f32.mrf.mxu0 }
  0xcb   :  { %v109_v36 = vrot.slane %v104_v35, 4  ;;  %v125_v37 = vmul.f32 %v104_v35, %v104_v35 }
  0xcc   :  { %v106_v38 = vpop.f32.mrf.mxu0 }
  0xcd   :  { %v110_v39 = vadd.f32 %v109_v36, %v104_v35  ;;  %v127_v40 = vrot.slane %v125_v37, 4  ;;  %v126_v41 = vmul.f32 %v106_v38, %v106_v38  ;;  %v116_v42 = vsel %vm115_vm1, %v106_v38, 0.0 }
  0xce   :  { %v117_v43 = vrot.slane %v116_v42, 4 }
  0xcf   :  { %v111_v44 = vrot.slane %v110_v39, 2  ;;  %v128_v45 = vadd.f32 %v127_v40, %v125_v37  ;;  %v133_v46 = vsel %vm115_vm1, %v126_v41, 0.0 }
  0xd0   :  { %v118_v47 = vadd.f32 %v117_v43, %v116_v42  ;;  %v134_v48 = vrot.slane %v133_v46, 4  ;;  %v334_v42 = vld [vmem:[%s845_s3 + $0x38] sm:$0xf]  ;;  %v331_v43 = vld [vmem:[%s845_s3 + $0x20] sm:$0xff] }
  0xd1   :  { %v112_v49 = vadd.f32 %v111_v44, %v110_v39  ;;  %v129_v50 = vrot.slane %v128_v45, 2  ;;  %561 = vmatpush3.msk.msra.mxu0 %vm338_vm4, %v334_v42  ;;  %v330_v44 = vld [vmem:[%s845_s3 + $0x18] sm:$0xff] }
  0xd2   :  { %v119_v51 = vrot.slane %v118_v47, 2  ;;  %v135_v52 = vadd.f32 %v134_v48, %v133_v46  ;;  %562 = vmatprep.subr.mxu0 %v596_v3  ;;  %v328_v46 = vld [vmem:[%s845_s3 + $0x8] sm:$0xff] }
  0xd3   :  { %v113_v53 = vrot.slane %v112_v49, 1  ;;  %v130_v54 = vadd.f32 %v129_v50, %v128_v45  ;;  %v329_v45 = vld [vmem:[%s845_s3 + $0x10] sm:$0xff] }
  0xd4   :  { %v120_v55 = vadd.f32 %v119_v51, %v118_v47  ;;  %v136_v56 = vrot.slane %v135_v52, 2  ;;  %v327_v47 = vld [vmem:[%s845_s3] sm:$0xff] }
  0xd5   :  { %v114_v57 = vadd.f32 %v113_v53, %v112_v49  ;;  %v131_v58 = vrot.slane %v130_v54, 1 }
  0xd6   :  { %v121_v59 = vrot.slane %v120_v55, 1  ;;  %v137_v60 = vadd.f32 %v136_v56, %v135_v52 }
  0xd7   :  { %v123_v61 = vmul.f32 0.125, %v114_v57  ;;  %v132_v62 = vadd.f32 %v131_v58, %v130_v54 }
  0xd8   :  { %v122_v63 = vadd.f32 %v121_v59, %v120_v55  ;;  %v138_v0 = vrot.slane %v137_v60, 1 }
  0xd9   :  { %v140_v1 = vmul.f32 0.125, %v132_v62  ;;  %v142_v2 = vmul.f32 %v123_v61, %v123_v61 }
  0xda   :  { %v124_v4 = vmul.f32 0.125, %v122_v63  ;;  %v139_v5 = vadd.f32 %v138_v0, %v137_v60 }
  0xdb   :  { %v144_v6 = vsub.f32 %v140_v1, %v142_v2 }
  0xdc   :  { %v141_v7 = vmul.f32 0.125, %v139_v5  ;;  %v143_v8 = vmul.f32 %v124_v4, %v124_v4 }
  0xdd   :  { %v146_v9 = vadd.f32 1e-05, %v144_v6 }
  0xde   :  { %v145_v10 = vsub.f32 %v141_v7, %v143_v8 }
  0xdf   :  { %588 = vrsqrt.f32 %v146_v9  ;;  %v316_v9 = vsub.s32 2, %v764_v13 }
  0xe0   :  { %v147_v11 = vadd.f32 1e-05, %v145_v10 }
  0xe2   :  { %590 = vrsqrt.f32 %v147_v11 }
  0xec   :  { %v589_v15 = vpop.eup %588 }
  0xed   :  { %v150_v16 = vmul.f32 %v589_v15, %v769_v14  ;;  %v321_v15 = vsub.s32 3, %v764_v13 }
  0xef   :  { %v591_v19 = vpop.eup %590  ;;  %v152_v20 = vmul.f32 %v150_v16, %v123_v61  ;;  %v165_v22 = vrot.slane %v150_v16, %v164_v17 }
  0xf0   :  { %v151_v21 = vmul.f32 %v591_v19, %v25_v18 }
  0xf1   :  { %v156_v24 = vrot.slane %v152_v20, 7  ;;  %v170_v29 = vmul.f32 %v165_v22, %v104_v35  ;;  %v333_v35 = vld [vmem:[%s845_s3 + $0x30] sm:$0xff]  ;;  %v454_v22 = vld [vmem:[%s846_s4 + $0x8] sm:$0x3] }
  0xf2   :  { %v153_v25 = vmul.f32 %v151_v21, %v124_v4  ;;  %v169_v28 = vrot.slane %v151_v21, %v164_v17  ;;  %563 = vmatpush3.msra.mxu0 %v333_v35 }
  0xf3   :  { %v160_v26 = vsub.f32 %v769_v14, %v156_v24  ;;  %564 = vmatprep.subr.mxu0 %v596_v3 }
  0xf4   :  { %v157_v27 = vrot.slane %v153_v25, 7  ;;  %v171_v33 = vmul.f32 %v169_v28, %v106_v38  ;;  %v332_v38 = vld [vmem:[%s845_s3 + $0x28] sm:$0xff] }
  0xf5   :  { %v175_v30 = vrot.slane %v160_v26, %v174_v23  ;;  %565 = vmatpush3.msra.mxu0 %v332_v38 }
  0xf6   :  { %v161_v31 = vsub.f32 %v25_v18, %v157_v27  ;;  %566 = vmatprep.subr.mxu0 %v596_v3 }
  0xf7   :  { %v180_v32 = vadd.f32 %v175_v30, %v170_v29  ;;  %567 = vmatpush3.msra.mxu0 %v331_v43 }
  0xf8   :  { %v179_v34 = vrot.slane %v161_v31, %v174_v23  ;;  %568 = vmatprep.subr.mxu0 %v596_v3  ;;  %v453_v23 = vld [vmem:[%s846_s4] sm:$0xff] }
  0xf9   :  { %v184_v37 = vmul.f32 0.01, %v180_v32  ;;  %vm182_vm3 = vcmp.ge.f32.partialorder %v180_v32, 0.0  ;;  %569 = vmatpush3.msra.mxu0 %v330_v44 }
  0xfa   :  { %v181_v36 = vadd.f32 %v179_v34, %v171_v33  ;;  %570 = vmatprep.subr.mxu0 %v596_v3 }
  0xfb   :  { %v186_v41 = vsel %vm182_vm3, %v180_v32, %v184_v37  ;;  %571 = vmatpush3.msra.mxu0 %v329_v45 }
  0xfc   :  { %vm183_vm2 = vcmp.ge.f32.partialorder %v181_v36, 0.0  ;;  %v185_v39 = vmul.f32 0.01, %v181_v36  ;;  %572 = vmatprep.subr.mxu0 %v596_v3 }
  0xfd   :  { %573 = vmatpush3.msra.mxu0 %v328_v46 }
  0xfe   :  { %v187_v40 = vsel %vm183_vm2, %v181_v36, %v185_v39  ;;  %574 = vmatprep.subr.mxu0 %v596_v3 }
  0xff   :  { %543 = vmatprep.mubr.msk.f32.mxu1 %vm115_vm1, %v187_v40  ;;  %575 = vmatpush3.msra.mxu0 %v327_v47  ;;  %v442_v47 = vsub.s32 4, %v764_v13 }
 0x100   :  { %281 = vmatmul.mubr.f32.vlgmr.msra.gmra.mxu1 %v186_v41  ;;  %579 = vmatprep.subr.mxu0 %v596_v3 }
 0x1c0   :  { %v282_v48 = vpop.f32.mrf.mxu1 }
 0x1c1   :  { %v287_v49 = vsel %vm286_vm6, %v282_v48, 0.0  ;;  %v295_v50 = vmul.f32 %v282_v48, %v282_v48 }
 0x1c2   :  { %v288_v51 = vrot.slane %v287_v49, 4  ;;  %v284_v52 = vpop.f32.mrf.mxu1 }
 0x1c3   :  { %v296_v53 = vsel %vm286_vm6, %v295_v50, 0.0 }
 0x1c4   :  { %v289_v54 = vadd.f32 %v288_v51, %v287_v49  ;;  %v297_v55 = vrot.slane %v296_v53, 4  ;;  %v447_v51 = vsub.s32 5, %v764_v13 }
 0x1c6   :  { %v290_v56 = vrot.slane %v289_v54, 2  ;;  %v298_v57 = vadd.f32 %v297_v55, %v296_v53 }
 0x1c8   :  { %v291_v58 = vadd.f32 %v290_v56, %v289_v54  ;;  %v299_v59 = vrot.slane %v298_v57, 2 }
 0x1ca   :  { %v292_v60 = vrot.slane %v291_v58, 1  ;;  %v300_v61 = vadd.f32 %v299_v59, %v298_v57 }
 0x1cc   :  { %v293_v62 = vadd.f32 %v292_v60, %v291_v58  ;;  %v301_v63 = vrot.slane %v300_v61, 1  ;;  %v457_v58 = vsub.s32 6, %v764_v13 }
 0x1ce   :  { %v294_v0 = vmul.f32 0.125, %v293_v62  ;;  %v302_v1 = vadd.f32 %v301_v63, %v300_v61  ;;  %v458_v59 = vrot.slane %v769_v14, %v457_v58 }
 0x1d0   :  { %v303_v2 = vmul.f32 0.125, %v302_v1  ;;  %v304_v4 = vmul.f32 %v294_v0, %v294_v0 }
 0x1d2   :  { %v305_v5 = vsub.f32 %v303_v2, %v304_v4 }
 0x1d4   :  { %v306_v6 = vadd.f32 1e-05, %v305_v5 }
 0x1d6   :  { %592 = vrsqrt.f32 %v306_v6 }
 0x1e3   :  { %v593_v7 = vpop.eup %592 }
 0x1e4   :  { %v308_v8 = vmul.f32 %v593_v7, %v769_v14 }
 0x1e6   :  { %v309_v10 = vmul.f32 %v308_v8, %v294_v0  ;;  %v317_v12 = vrot.slane %v308_v8, %v316_v9 }
 0x1e8   :  { %v311_v11 = vrot.slane %v309_v10, 7  ;;  %v318_v17 = vmul.f32 %v317_v12, %v282_v48 }
 0x1ea   :  { %v313_v16 = vsub.f32 %v769_v14, %v311_v11 }
 0x1ec   :  { %v322_v18 = vrot.slane %v313_v16, %v321_v15 }
 0x1ee   :  { %v323_v19 = vadd.f32 %v322_v18, %v318_v17 }
 0x1f0   :  { %v325_v20 = vmul.f32 0.01, %v323_v19  ;;  %vm324_vm7 = vcmp.ge.f32.partialorder %v323_v19, 0.0 }
 0x1f2   :  { %v326_v21 = vsel %vm324_vm7, %v323_v19, %v325_v20 }
 0x1f3   :  { %577 = vmatmul.mubr.msk.f32.vlgmr.msra.gmra.mxu0 %vm286_vm6, %v326_v21 }
 0x1f4   :  { %583 = vmatprep.mubr.msk.f32.mxu0 %vm597_vm5, %v596_v3  ;;  %580 = vmatpush3.msk.msra.mxu0 %vm462_vm8, %v454_v22 }
 0x1f5   :  { %581 = vmatprep.subr.mxu0 %v596_v3 }
 0x1f6   :  { %582 = vmatpush3.msra.mxu0 %v453_v23 }
 0x2b3   :  { %v408_v24 = vpop.f32.mrf.mxu0 }
 0x2b4   :  { %v413_v25 = vsel %vm412_vm9, %v408_v24, 0.0  ;;  %v421_v26 = vmul.f32 %v408_v24, %v408_v24 }
 0x2b5   :  { %v414_v27 = vrot.slane %v413_v25, 4  ;;  %v578_v28 = vpop.f32.mrf.mxu0 }
 0x2b6   :  { %v422_v29 = vsel %vm412_vm9, %v421_v26, 0.0 }
 0x2b7   :  { %v415_v30 = vadd.f32 %v414_v27, %v413_v25  ;;  %v423_v31 = vrot.slane %v422_v29, 4 }
 0x2b9   :  { %v416_v32 = vrot.slane %v415_v30, 2  ;;  %v424_v33 = vadd.f32 %v423_v31, %v422_v29 }
 0x2bb   :  { %v417_v34 = vadd.f32 %v416_v32, %v415_v30  ;;  %v425_v36 = vrot.slane %v424_v33, 2 }
 0x2bd   :  { %v418_v37 = vrot.slane %v417_v34, 1  ;;  %v426_v39 = vadd.f32 %v425_v36, %v424_v33 }
 0x2bf   :  { %v419_v40 = vadd.f32 %v418_v37, %v417_v34  ;;  %v427_v3 = vrot.slane %v426_v39, 1 }
 0x2c1   :  { %v420_v41 = vmul.f32 0.125, %v419_v40  ;;  %v428_v42 = vadd.f32 %v427_v3, %v426_v39 }
 0x2c3   :  { %v429_v35 = vmul.f32 0.125, %v428_v42  ;;  %v430_v38 = vmul.f32 %v420_v41, %v420_v41 }
 0x2c5   :  { %v431_v43 = vsub.f32 %v429_v35, %v430_v38 }
 0x2c7   :  { %v432_v44 = vadd.f32 1e-05, %v431_v43 }
 0x2c9   :  { %594 = vrsqrt.f32 %v432_v44 }
 0x2d6   :  { %v595_v45 = vpop.eup %594 }
 0x2d7   :  { %v434_v46 = vmul.f32 %v595_v45, %v769_v14 }
 0x2d9   :  { %v435_v48 = vmul.f32 %v434_v46, %v420_v41  ;;  %v443_v50 = vrot.slane %v434_v46, %v442_v47 }
 0x2db   :  { %v437_v49 = vrot.slane %v435_v48, 7  ;;  %v444_v53 = vmul.f32 %v443_v50, %v408_v24 }
 0x2dd   :  { %v439_v52 = vsub.f32 %v769_v14, %v437_v49 }
 0x2df   :  { %v448_v54 = vrot.slane %v439_v52, %v447_v51 }
 0x2e1   :  { %v449_v55 = vadd.f32 %v448_v54, %v444_v53 }
 0x2e3   :  { %v451_v56 = vmul.f32 0.01, %v449_v55  ;;  %vm450_vm10 = vcmp.ge.f32.partialorder %v449_v55, 0.0 }
 0x2e5   :  { %v452_v57 = vsel %vm450_vm10, %v449_v55, %v451_v56 }
 0x2e6   :  { %584 = vmatmul.mubr.msk.f32.vlgmr.msra.gmra.mxu0 %vm412_vm9, %v452_v57 }
 0x3a6   :  { %v532_v60 = vpop.f32.mrf.mxu0 }
 0x3a7   :  { %v533_v61 = vadd.f32 %v532_v60, %v458_v59 }
 0x3a8   :  { %v585_v62 = vpop.f32.mrf.mxu0 }
 0x3a9   :  { %537 = vst.msk [vmem:[%s847_s6] sm:$0xff] %vm536_vm11, %v533_v61 }

</bundles_post_ra>
